<compile_context>
chip_gen: v7x
topology: tpu7x:2x2x1
jax: 0.10.0
libtpu: 0.0.40
codegen_flags: <defaults>
</compile_context>

<pallas_src>
import functools

import jax
import jax.numpy as jnp
from jax.experimental import pallas as pl
from jax.experimental.pallas import tpu as pltpu


def _round_up(x, m):
    return ((x + m - 1) // m) * m


def _mlp_kernel(x_ref, w1_ref, b1_ref, w2_ref, b2_ref, o_ref, *, compute_dtype):
    x = x_ref[...]
    if compute_dtype is not None:
        x = x.astype(compute_dtype)          # cast in-kernel (no extra HBM pass)
    # Layer 1: Linear + LeakyReLU(0.2). f32 accumulation on the MXU.
    h = jnp.dot(x, w1_ref[...], preferred_element_type=jnp.float32)
    h = h + b1_ref[...]                      # (TB, Hp) + (1, Hp) broadcast, f32
    h = jnp.maximum(h, 0.2 * h)              # LeakyReLU(0.2): mul+max (2 VALU ops)
    # Layer 2 (output): Linear + ReLU.
    y = jnp.dot(h.astype(w2_ref.dtype), w2_ref[...],
                preferred_element_type=jnp.float32)
    y = y + b2_ref[...]                      # (TB, Op) + (1, Op) broadcast, f32
    o_ref[...] = jnp.maximum(y, 0.0).astype(o_ref.dtype)
    # Dropout(p=0) / GaussianNoiseAugmentation(std=0) are identity -> omitted.
    # TODO(synk): training-mode dropout / gaussian noise would need
    # pltpu.prng_seed + pltpu.prng_random_bits; not part of the eval path.


@functools.partial(jax.jit, static_argnames=("block_b", "compute_dtype"))
def mlp_forward(x, w1, b1, w2, b2, *, block_b=1024, compute_dtype=jnp.bfloat16):
    """x: (B, in_f); w1: (in_f, H); b1: (H,); w2: (H, out_f); b2: (out_f,).

    Weights are stored pre-transposed as (in, out) so the kernel computes
    x @ W + b directly on the MXU. compute_dtype=None keeps exact f32 math.
    """
    B, in_f = x.shape
    H = w1.shape[1]
    out_f = w2.shape[1]
    out_dtype = x.dtype

    w_dtype = compute_dtype if compute_dtype is not None else w1.dtype
    w1 = w1.astype(w_dtype)
    w2 = w2.astype(w_dtype)

    # --- Weight-side padding only (x is streamed unpadded, full-dim last axis).
    # Zero padding is exact: padded hidden columns give LeakyReLU(0)=0 and the
    # matching padded w2 rows are zero. Pad the output only when it is already
    # lane-scale; tiny out_f keeps a full-dim block (less HBM write traffic).
    H_p = _round_up(H, 128) if H > 128 else H
    O_p = _round_up(out_f, 128) if out_f > 128 else out_f
    pad_out = O_p != out_f
    if H_p != H:
        w1 = jnp.pad(w1, ((0, 0), (0, H_p - H)))
        b1 = jnp.pad(b1, ((0, H_p - H),))
        w2 = jnp.pad(w2, ((0, H_p - H), (0, 0)))
    if pad_out:
        w2 = jnp.pad(w2, ((0, 0), (0, O_p - out_f)))
        b2 = jnp.pad(b2, ((0, O_p - out_f),))

    b1_2d = b1.astype(jnp.float32).reshape(1, H_p)
    b2_2d = b2.astype(jnp.float32).reshape(1, O_p)

    # --- Batch tile: large (amortize ~0.35us/step + long DMA bursts), rounded
    #     to the sublane pack of the compute dtype, and capped so the batch
    #     grid has >=2 steps when possible (keeps both v7x TensorCores busy).
    pack_itemsize = jnp.dtype(compute_dtype if compute_dtype is not None
                              else x.dtype).itemsize
    sub = max(8, 32 // int(pack_itemsize))       # 8 f32, 16 bf16, 32 int8/fp8
    bb = min(int(block_b), _round_up(B, sub))
    bb = max(sub, _round_up(bb, sub))
    if B >= 2 * sub:
        bb = min(bb, max(sub, _round_up(pl.cdiv(B, 2), sub)))
    grid = (pl.cdiv(B, bb),)

    # --- VMEM budget: single-buffered resident weights + double-buffered
    #     activation tiles + f32 intermediates, 2x headroom, floor 32 MiB,
    #     capped at 3/4 of this generation's physical VMEM (64 MiB on v7x,
    #     128 MiB on v5e/v6e) and never above 96 MiB.
    wbytes = jnp.dtype(w_dtype).itemsize
    xbytes = jnp.dtype(x.dtype).itemsize
    obytes = jnp.dtype(out_dtype).itemsize
    vmem_need = (
        (in_f * H_p + H_p * O_p) * wbytes      # weights (single-buffered)
        + (H_p + O_p) * 4                      # biases (f32)
        + 2 * bb * in_f * xbytes               # x tiles (double-buffered)
        + 2 * bb * O_p * obytes                # out tiles (double-buffered)
        + bb * (H_p + O_p) * 4                 # f32 intermediates
    )
    try:
        vmem_cap = int(getattr(pltpu.get_tpu_info(), "vmem_capacity_bytes",
                               64 << 20))
    except Exception:                          # pragma: no cover
        vmem_cap = 64 << 20                    # conservative (v7x per-TC)
    vmem_limit = int(min(max(2 * vmem_need, 32 << 20),
                         (vmem_cap * 3) // 4, 96 << 20))
    # TODO(synk): if resident weights (in_f*H_p + H_p*O_p)*wbytes exceed
    # ~40 MiB (hit at half the model size on v7x's 64 MiB VMEM), add H / O
    # grid axes with an f32 accumulator scratch instead of full weight loads.

    cost = pl.CostEstimate(
        flops=2 * B * (in_f * H + H * out_f),
        transcendentals=0,
        bytes_accessed=int(B * in_f * xbytes
                           + (in_f * H_p + H_p * O_p) * wbytes
                           + (H_p + O_p) * 4
                           + B * O_p * obytes),
    )

    kernel = functools.partial(_mlp_kernel, compute_dtype=compute_dtype)

    out = pl.pallas_call(
        kernel,
        out_shape=jax.ShapeDtypeStruct((B, O_p), out_dtype),
        grid_spec=pltpu.PrefetchScalarGridSpec(
            num_scalar_prefetch=0,
            grid=grid,
            in_specs=[
                # x tile: streamed over the batch grid axis (double-buffered),
                # last dim equals the full array dim -> no padding required.
                pl.BlockSpec((bb, in_f), lambda i: (i, 0)),
                # Weights / biases: grid-invariant -> single-buffered, resident.
                pl.BlockSpec((in_f, H_p), lambda i: (0, 0),
                             pipeline_mode=pl.Buffered(1)),
                pl.BlockSpec((1, H_p), lambda i: (0, 0),
                             pipeline_mode=pl.Buffered(1)),
                pl.BlockSpec((H_p, O_p), lambda i: (0, 0),
                             pipeline_mode=pl.Buffered(1)),
                pl.BlockSpec((1, O_p), lambda i: (0, 0),
                             pipeline_mode=pl.Buffered(1)),
            ],
            out_specs=pl.BlockSpec((bb, O_p), lambda i: (i, 0)),
        ),
        compiler_params=pltpu.CompilerParams(
            dimension_semantics=("parallel",),   # batch axis -> megacore shardable
            vmem_limit_bytes=vmem_limit,
        ),
        cost_estimate=cost,
    )(x, w1, b1_2d, w2, b2_2d)

    return out[:, :out_f] if pad_out else out


def init_mlp_params(key, in_features, hidden, out_features, dtype=jnp.float32):
    """Deterministic init matching nn.Linear default: U(-1/sqrt(fan_in), 1/sqrt(fan_in))."""
    k1, k2, k3, k4 = jax.random.split(key, 4)
    bound1 = 1.0 / jnp.sqrt(in_features)
    bound2 = 1.0 / jnp.sqrt(hidden)
    # stored already transposed: (in, out)
    w1 = jax.random.uniform(k1, (in_features, hidden), dtype, -bound1, bound1)
    b1 = jax.random.uniform(k2, (hidden,), dtype, -bound1, bound1)
    w2 = jax.random.uniform(k3, (hidden, out_features), dtype, -bound2, bound2)
    b2 = jax.random.uniform(k4, (out_features,), dtype, -bound2, bound2)
    return w1, b1, w2, b2


def mlp_reference(x, w1, b1, w2, b2):
    h = x @ w1 + b1
    h = jnp.where(h >= 0, h, 0.2 * h)
    y = h @ w2 + b2
    return jnp.maximum(y, 0.0)


if __name__ == "__main__":
    key = jax.random.PRNGKey(0)
    kx, kp = jax.random.split(key)

    # 1) Small shapes consistent with MLP(in_features=16, out_features=16,
    #    hidden_layers=32): x is (batch, in_features). Exact f32 path.
    batch, in_features, hidden, out_features = 8, 16, 32, 16
    x = jax.random.normal(kx, (batch, in_features), jnp.float32)
    w1, b1, w2, b2 = init_mlp_params(kp, in_features, hidden, out_features)
    ref = mlp_reference(x, w1, b1, w2, b2)

    out = jax.block_until_ready(mlp_forward(x, w1, b1, w2, b2, compute_dtype=None))
    assert out.shape == (batch, out_features)
    assert jnp.allclose(out, ref, atol=1e-5, rtol=1e-5), "f32 mismatch vs reference"

    # Same shapes through the default bf16-MXU path (f32 accumulation).
    out_bf = jax.block_until_ready(mlp_forward(x, w1, b1, w2, b2))
    assert jnp.allclose(out_bf, ref, atol=1e-1, rtol=1e-1), "bf16 mismatch (small)"

    # 2) Larger, lane-aligned shapes exercising big tiles + >=2 grid steps.
    b2_, i2, h2, o2 = 512, 256, 512, 256
    x2 = jax.random.normal(kx, (b2_, i2), jnp.float32)
    params2 = init_mlp_params(kp, i2, h2, o2)
    out2 = jax.block_until_ready(mlp_forward(x2, *params2, block_b=1024))
    ref2 = mlp_reference(x2, *params2)
    assert out2.shape == (b2_, o2)
    assert jnp.allclose(out2.astype(jnp.float32), ref2, atol=1e-1, rtol=1e-1), \
        "bf16 mismatch vs f32 reference (large)"

    # 3) Non-lane-aligned hidden/output (> 128) exercising the pad + slice
    #    path and a partial last batch block. Exact f32 path.
    b3, i3, h3, o3 = 40, 48, 200, 160
    x3 = jax.random.normal(kx, (b3, i3), jnp.float32)
    params3 = init_mlp_params(kp, i3, h3, o3)
    out3 = jax.block_until_ready(mlp_forward(x3, *params3, compute_dtype=None))
    ref3 = mlp_reference(x3, *params3)
    assert out3.shape == (b3, o3)
    assert jnp.allclose(out3, ref3, atol=1e-5, rtol=1e-5), "padded-path mismatch"

    print("KERNEL_OK")
</pallas_src>

<mosaic_0001>
module attributes {stable_mosaic.version = 11 : i64} {
  func.func @_mlp_kernel(%arg0: i32, %arg1: memref<8x16xf32, #tpu.memory_space<vmem>>, %arg2: memref<16x32xf32, #tpu.memory_space<vmem>>, %arg3: memref<1x32xf32, #tpu.memory_space<vmem>>, %arg4: memref<32x16xf32, #tpu.memory_space<vmem>>, %arg5: memref<1x16xf32, #tpu.memory_space<vmem>>, %arg6: memref<8x16xf32, #tpu.memory_space<vmem>>) attributes {dimension_semantics = [#tpu.dimension_semantics<parallel>], iteration_bounds = array<i64: 1>, scalar_prefetch = 0 : i64, scratch_operands = 0 : i64, tpu.core_type = #tpu.core_type<tc>, window_params = [{transform_indices = @transform_0, window_bounds = array<i64: 8, 16>}, {pipeline_mode = #tpu.pipeline_mode<synchronous>, transform_indices = @transform_1, window_bounds = array<i64: 16, 32>}, {pipeline_mode = #tpu.pipeline_mode<synchronous>, transform_indices = @transform_2, window_bounds = array<i64: 1, 32>}, {pipeline_mode = #tpu.pipeline_mode<synchronous>, transform_indices = @transform_3, window_bounds = array<i64: 32, 16>}, {pipeline_mode = #tpu.pipeline_mode<synchronous>, transform_indices = @transform_4, window_bounds = array<i64: 1, 16>}, {transform_indices = @transform_5, window_bounds = array<i64: 8, 16>}]} {
    %c0 = arith.constant 0 : index
    %c0_0 = arith.constant 0 : index
    %0 = vector.load %arg1[%c0, %c0_0] : memref<8x16xf32, #tpu.memory_space<vmem>>, vector<8x16xf32>
    %c0_1 = arith.constant 0 : index
    %c0_2 = arith.constant 0 : index
    %1 = vector.load %arg2[%c0_1, %c0_2] : memref<16x32xf32, #tpu.memory_space<vmem>>, vector<16x32xf32>
    %cst = arith.constant dense<0.000000e+00> : vector<8x32xf32>
    %2 = tpu.matmul %0, %1, %cst {dimension_numbers = #tpu.dot_dimension_numbers<[1], [0], [0], [1], [0, 0, 1, 1], [], []>} : vector<8x16xf32>, vector<16x32xf32>, vector<8x32xf32> -> vector<8x32xf32>
    %c0_3 = arith.constant 0 : index
    %c0_4 = arith.constant 0 : index
    %3 = vector.load %arg3[%c0_3, %c0_4] : memref<1x32xf32, #tpu.memory_space<vmem>>, vector<1x32xf32>
    %4 = vector.broadcast %3 : vector<1x32xf32> to vector<8x32xf32>
    %5 = arith.addf %2, %4 : vector<8x32xf32>
    %cst_5 = arith.constant 2.000000e-01 : f32
    %6 = vector.broadcast %cst_5 : f32 to vector<8x32xf32>
    %7 = arith.mulf %6, %5 : vector<8x32xf32>
    %8 = arith.maximumf %5, %7 : vector<8x32xf32>
    %c0_6 = arith.constant 0 : index
    %c0_7 = arith.constant 0 : index
    %9 = vector.load %arg4[%c0_6, %c0_7] : memref<32x16xf32, #tpu.memory_space<vmem>>, vector<32x16xf32>
    %cst_8 = arith.constant dense<0.000000e+00> : vector<8x16xf32>
    %10 = tpu.matmul %8, %9, %cst_8 {dimension_numbers = #tpu.dot_dimension_numbers<[1], [0], [0], [1], [0, 0, 1, 1], [], []>} : vector<8x32xf32>, vector<32x16xf32>, vector<8x16xf32> -> vector<8x16xf32>
    %c0_9 = arith.constant 0 : index
    %c0_10 = arith.constant 0 : index
    %11 = vector.load %arg5[%c0_9, %c0_10] : memref<1x16xf32, #tpu.memory_space<vmem>>, vector<1x16xf32>
    %12 = vector.broadcast %11 : vector<1x16xf32> to vector<8x16xf32>
    %13 = arith.addf %10, %12 : vector<8x16xf32>
    %cst_11 = arith.constant 0.000000e+00 : f32
    %14 = vector.broadcast %cst_11 : f32 to vector<8x16xf32>
    %15 = arith.maximumf %13, %14 : vector<8x16xf32>
    %c0_12 = arith.constant 0 : index
    %c0_13 = arith.constant 0 : index
    %16 = vector.load %arg6[%c0_12, %c0_13] : memref<8x16xf32, #tpu.memory_space<vmem>>, vector<8x16xf32>
    tpu.vector_store %arg6[%c0_12, %c0_13], %15 {strides = array<i32>} : memref<8x16xf32, #tpu.memory_space<vmem>>, vector<8x16xf32>,
    return
  }
  func.func @transform_0(%arg0: i32) -> (i32, i32) {
    %c0_i32 = arith.constant 0 : i32
    %c0_i32_0 = arith.constant 0 : i32
    return %arg0, %c0_i32 : i32, i32
  }
  func.func @transform_1(%arg0: i32) -> (i32, i32) {
    %c0_i32 = arith.constant 0 : i32
    %c0_i32_0 = arith.constant 0 : i32
    %c0_i32_1 = arith.constant 0 : i32
    return %c0_i32, %c0_i32_0 : i32, i32
  }
  func.func @transform_2(%arg0: i32) -> (i32, i32) {
    %c0_i32 = arith.constant 0 : i32
    %c0_i32_0 = arith.constant 0 : i32
    %c0_i32_1 = arith.constant 0 : i32
    return %c0_i32, %c0_i32_0 : i32, i32
  }
  func.func @transform_3(%arg0: i32) -> (i32, i32) {
    %c0_i32 = arith.constant 0 : i32
    %c0_i32_0 = arith.constant 0 : i32
    %c0_i32_1 = arith.constant 0 : i32
    return %c0_i32, %c0_i32_0 : i32, i32
  }
  func.func @transform_4(%arg0: i32) -> (i32, i32) {
    %c0_i32 = arith.constant 0 : i32
    %c0_i32_0 = arith.constant 0 : i32
    %c0_i32_1 = arith.constant 0 : i32
    return %c0_i32, %c0_i32_0 : i32, i32
  }
  func.func @transform_5(%arg0: i32) -> (i32, i32) {
    %c0_i32 = arith.constant 0 : i32
    %c0_i32_0 = arith.constant 0 : i32
    return %arg0, %c0_i32 : i32, i32
  }
}

</mosaic_0001>

<bundles_post_ra>
// kernel: mlp_forward.1
= control target key start
LH: loop header
LB: loop body
LE: loop exit
PB: predicated region body
PF: predicated region fallthrough
CT: control target
= control target key end

     0   :  { %v275_v2 = vmov 0.0|0.0   ;;  %vm276_vm0 = vmmov 0   ;;  %v277_v4 = vmov 0.0   ;;  %s350_s0 = inlined_call_operand.vmem [shape: f32[8,16], index: 0, kind: input, shape index: {}]   ;;  %s351_s1 = inlined_call_operand.vmem [shape: f32[16,32], index: 1, kind: input, shape index: {}]   ;;  %s352_s2 = inlined_call_operand.vmem [shape: f32[1,32], index: 2, kind: input, shape index: {}]   ;;  %s353_s3 = inlined_call_operand.vmem [shape: f32[32,16], index: 3, kind: input, shape index: {}]   ;;  %s354_s4 = inlined_call_operand.vmem [shape: f32[1,16], index: 4, kind: input, shape index: {}]   ;;  %s355_s5 = inlined_call_operand.hbm [shape: f32[8,16], index: 5, kind: output, shape index: {}]  }
   0x1   :  { %v22_v0 = vld [vmem:[%s351_s1] sm:$0xff]  ;;  %v23_v1 = vld [vmem:[%s351_s1 + $0x8] sm:$0xff]  ;;  %238 = vmatprep.subr.bf16.mxu0 %v275_v2  ;;  %224 = vmatprep.mubr.msk.f32.mxu0 %vm276_vm0, %v277_v4 }
   0x2   :  { %v239_v3 = vpack.c.bf16 %v23_v1, %v22_v0 }
   0x3   :  { %10 = vsyncpa [#allocation3], 0  ;;  %241 = vmatprep.subr.bf16.mxu1 %v275_v2  ;;  %235 = vmatprep.mubr.msk.f32.mxu1 %vm276_vm0, %v277_v4  ;;  %v21_v5 = vld [vmem:[%s350_s0] sm:$0xff]  ;;  %vm31_vm1 = vcmask 130048   ;;  %v108_v7 = vld [vmem:[%s353_s3 + $0x8] sm:$0xff]  ;;  %vm118_vm2 = vcmask 261120  }
   0x4   :  { %240 = vmatpush3.bf16.msra.mxu0 %v239_v3  ;;  %v107_v6 = vld [vmem:[%s353_s3] sm:$0xff]  ;;  %v109_v9 = vld [vmem:[%s353_s3 + $0x10] sm:$0xff]  ;;  %v110_v10 = vld [vmem:[%s353_s3 + $0x18] sm:$0xff]  ;;  %s278_s9 = smov [#allocation2]  }
   0x5   :  { %v242_v8 = vpack.c.bf16 %v108_v7, %v107_v6  ;;  %v245_v11 = vpack.c.bf16 %v110_v10, %v109_v9  ;;  %v208_v12 = vld [vmem:[%s352_s2] ss:$0 sm:$0xff]  ;;  %s200_s3 = sshll.u32 %s278_s9, 4  ;;  %s201_s3 = int_to_ptr.vmem [resolvable:$true] %s200_s3 }
   0x6   :  { %v210_v18 = vld [vmem:[%s354_s4] ss:$0 sm:$0xff]  ;;  %s251_s2 = scalar_lea.vmem %s201_s3, 128  ;;  %p256_p1 = scmp.lt.s32.totalorder %s201_s3, %s201_s3 }
   0x7   :  { %225 = vmatmul.mubr.msk.f32.vlgmr.msra.gmra.mrb[0].mxu0 %vm31_vm1, %v21_v5  ;;  %243 = vmatpush3.bf16.msra.mxu1 %v242_v8  ;;  %p252_p0 = scmp.ne.s32.totalorder %s201_s3, %s251_s2  ;;  %p257_p2 = scmp.lt.s32.totalorder %s251_s2, %s251_s2 }
   0x8   :  { %244 = vmatprep.subr.bf16.mxu1 %v275_v2 }
   0x9   :  { %p258_p3 = por %p257_p2, %p256_p1 }
   0xb   :  { %246 = vmatpush3.bf16.msra.mxu1 %v245_v11  ;;  %p259_p4 = pnand %p258_p3, %p252_p0 }
  0xda   :  { %v101_v13 = vpop.f32.mrb[0].mxu0 }
  0xdb   :  { %v102_v14 = vadd.f32 %v208_v12, %v101_v13  ;;  %v226_v15 = vpop.f32.mrb[1].mxu0 }
  0xdd   :  { %v105_v16 = vmul.f32 0.2, %v102_v14 }
  0xdf   :  { %v106_v17 = vmax.f32 %v102_v14, %v105_v16 }
  0xe1   :  { %236 = vmatmul.mubr.msk.f32.vlgmr.msra.gmra.mrb[0].mxu1 %vm118_vm2, %v106_v17 }
 0x1b4   :  { %v188_v19 = vpop.f32.mrb[0].mxu1 }
 0x1b5   :  { %v189_v20 = vadd.f32 %v210_v18, %v188_v19  ;;  %v237_v21 = vpop.f32.mrb[1].mxu1 }
 0x1b7   :  { %v192_v22 = vmax.f32 %v189_v20, 0.0 }
 0x1b9   :  { %193 = vst.msk [vmem:[#allocation2] sm:$0xff] %vm31_vm1, %v192_v22 }
 0x1ba   :  { %262 = shalt.err (!%p259_p4)
}
 0x1bb   :  { %s263_s4 = scalar_lea.hbm %s355_s5, 128 }
 0x1bc   :  { %p264_p5 = scmp.ne.s32.totalorder %s355_s5, %s263_s4  ;;  %p267_p6 = scmp.lt.u32.totalorder %s263_s4, %s355_s5 }
 0x1be   :  { %p269_p7 = pnand %p267_p6, %p264_p5 }
 0x1c0   :  { %272 = shalt.err (!%p269_p7)
}
 0x1c1   :  { %203 = dma.vmem_to_hbm [thread:$0]  %s201_s3, 128, %s355_s5, [#allocation3]  }
 0x1c2   :  { %273 = dma.done.wait [#allocation3], 128  }
 0x1c3   :  { %274 = vsyncadd [#allocation3], 4294967168 }
 0x1c4   :  { %207 = vsyncpa [#allocation3], 1 }

</bundles_post_ra>
